<compile_context>
chip_gen: v7x
topology: tpu7x:2x2x1
jax: 0.10.0
libtpu: 0.0.40
codegen_flags: <defaults>
</compile_context>

<pallas_src>
import math

import jax
import jax.numpy as jnp
from jax.experimental import pallas as pl
from jax.experimental.pallas import tpu as pltpu


def actor_mlp_kernel(x_ref, w1_ref, b1_ref, w2_ref, b2_ref,
                     w3_ref, b3_ref, w4_ref, b4_ref, probs_ref):
    # linear1 + ReLU  (f32 MXU operands, f32 accumulation)
    h = jnp.dot(x_ref[...], w1_ref[...], preferred_element_type=jnp.float32)
    h = jnp.maximum(h + b1_ref[...], 0.0)
    # linear2 + ReLU
    h = jnp.dot(h, w2_ref[...], preferred_element_type=jnp.float32)
    h = jnp.maximum(h + b2_ref[...], 0.0)
    # linear3 + ReLU
    h = jnp.dot(h, w3_ref[...], preferred_element_type=jnp.float32)
    h = jnp.maximum(h + b3_ref[...], 0.0)
    # linear4 (lane-padded to 128 columns; padded bias = -1e9 so softmax ignores them)
    logits = jnp.dot(h, w4_ref[...], preferred_element_type=jnp.float32)
    logits = logits + b4_ref[...]
    # Numerically stable softmax(dim=-1) with an exact denominator.
    m = jnp.max(logits, axis=-1, keepdims=True)
    e = jnp.exp(logits - m)
    denom = jnp.sum(e, axis=-1, keepdims=True)
    probs_ref[...] = (e / denom).astype(probs_ref.dtype)


def _round_up(n, m):
    return ((n + m - 1) // m) * m


def prepare_actor_params(params, *, lane=128, neg_bias=-1e9):
    """One-time prep (outside the RL inner loop): pad layer 4 to a lane-dense
    (multiple-of-128) output width. Padded weight columns are zero; padded bias
    entries are -1e9 so the softmax puts no mass on them."""
    out = dict(params)
    w4, b4 = params["w4"], params["b4"]
    out_size = w4.shape[1]
    padded = _round_up(out_size, lane)
    if padded != out_size:
        out["w4"] = jnp.pad(w4, ((0, 0), (0, padded - out_size)))
        out["b4"] = jnp.pad(b4, ((0, 0), (0, padded - out_size)),
                            constant_values=neg_bias)
    return out, out_size


def actor_network_forward(x, params, out_size, *, tm=1024):
    """Run the ActorNetwork MLP + softmax in one Pallas call.

    x: [B, input_size] float32
    params: dict from prepare_actor_params (w1..w4 as [in, out], b1..b4 as [1, out],
            layer 4 already lane-padded).
    Returns probs: [B, out_size] float32 (rows sum to 1).
    """
    w1, b1 = params["w1"], params["b1"]
    w2, b2 = params["w2"], params["b2"]
    w3, b3 = params["w3"], params["b3"]
    w4, b4 = params["w4"], params["b4"]

    B, in_size = x.shape
    out_pad = w4.shape[1]

    # Batch tile: large (default up to 1024 rows) but capped at ~B/2 (rounded to
    # the 8-row sublane granule) so the grid has >= 2 steps whenever possible and
    # both v7x TensorCores get work. Partial last blocks are masked by Pallas, so
    # no eager padding of x is needed (padded rows compute garbage that is dropped).
    TM = max(8, min(tm, _round_up(pl.cdiv(B, 2), 8)))
    grid = (pl.cdiv(B, TM),)

    def resident(arr):
        # Constant block index -> weights/biases stay VMEM-resident across steps.
        return pl.BlockSpec(arr.shape, lambda i: (0, 0))

    probs = pl.pallas_call(
        actor_mlp_kernel,
        out_shape=jax.ShapeDtypeStruct((B, out_pad), jnp.float32),
        grid=grid,
        in_specs=[
            pl.BlockSpec((TM, in_size), lambda i: (i, 0)),
            resident(w1), resident(b1),
            resident(w2), resident(b2),
            resident(w3), resident(b3),
            resident(w4), resident(b4),
        ],
        out_specs=pl.BlockSpec((TM, out_pad), lambda i: (i, 0)),
        compiler_params=pltpu.CompilerParams(
            dimension_semantics=("parallel",)),
    )(x, w1, b1, w2, b2, w3, b3, w4, b4)

    return probs[:, :out_size] if out_pad != out_size else probs


def init_linear_params(key, in_features, out_features):
    """Deterministic init mimicking torch.nn.Linear default (uniform +/- 1/sqrt(in))."""
    kw, kb = jax.random.split(key)
    bound = 1.0 / math.sqrt(in_features)
    # Stored as [in, out] (transpose of PyTorch's [out, in]) for x @ W.
    w = jax.random.uniform(kw, (in_features, out_features), jnp.float32,
                           minval=-bound, maxval=bound)
    b = jax.random.uniform(kb, (1, out_features), jnp.float32,
                           minval=-bound, maxval=bound)
    return w, b


if __name__ == "__main__":
    # Small shapes consistent with the module signature:
    # input_size=16, hidden1=32, hidden2=64, hidden3=32, output_size=8, batch=8
    input_size, h1, h2, h3, output_size = 16, 32, 64, 32, 8
    batch = 8

    key = jax.random.PRNGKey(0)
    k_x, k1, k2, k3, k4 = jax.random.split(key, 5)

    w1, b1 = init_linear_params(k1, input_size, h1)
    w2, b2 = init_linear_params(k2, h1, h2)
    w3, b3 = init_linear_params(k3, h2, h3)
    w4, b4 = init_linear_params(k4, h3, output_size)
    params = dict(w1=w1, b1=b1, w2=w2, b2=b2, w3=w3, b3=b3, w4=w4, b4=b4)

    # One-time prep (lane-dense layer 4), outside the per-step forward.
    prepped, out_size = prepare_actor_params(params)

    x = jax.random.normal(k_x, (batch, input_size), jnp.float32)

    probs = actor_network_forward(x, prepped, out_size)
    probs = jax.block_until_ready(probs)

    # Sanity: Categorical parameterization -> each row is a probability simplex.
    assert probs.shape == (batch, output_size)
    row_sums = jnp.sum(probs, axis=-1)
    assert bool(jnp.all(jnp.abs(row_sums - 1.0) < 1e-4)), row_sums
    assert bool(jnp.all(probs >= 0.0))

    # Reference check against the plain f32 MLP+softmax (tolerance covers TPU
    # default matmul precision differences between the kernel and XLA).
    def ref_f32(x, p):
        h = jnp.maximum(x @ p["w1"] + p["b1"], 0.0)
        h = jnp.maximum(h @ p["w2"] + p["b2"], 0.0)
        h = jnp.maximum(h @ p["w3"] + p["b3"], 0.0)
        return jax.nn.softmax(h @ p["w4"] + p["b4"], axis=-1)

    ref_probs = ref_f32(x, params)
    assert bool(jnp.max(jnp.abs(probs - ref_probs)) < 2e-2)

    print("KERNEL_OK")
</pallas_src>

<mosaic_0001>
module attributes {stable_mosaic.version = 11 : i64} {
  func.func @actor_mlp_kernel(%arg0: i32, %arg1: memref<8x16xf32, #tpu.memory_space<vmem>>, %arg2: memref<16x32xf32, #tpu.memory_space<vmem>>, %arg3: memref<1x32xf32, #tpu.memory_space<vmem>>, %arg4: memref<32x64xf32, #tpu.memory_space<vmem>>, %arg5: memref<1x64xf32, #tpu.memory_space<vmem>>, %arg6: memref<64x32xf32, #tpu.memory_space<vmem>>, %arg7: memref<1x32xf32, #tpu.memory_space<vmem>>, %arg8: memref<32x128xf32, #tpu.memory_space<vmem>>, %arg9: memref<1x128xf32, #tpu.memory_space<vmem>>, %arg10: memref<8x128xf32, #tpu.memory_space<vmem>>) attributes {dimension_semantics = [#tpu.dimension_semantics<parallel>], iteration_bounds = array<i64: 1>, scalar_prefetch = 0 : i64, scratch_operands = 0 : i64, tpu.core_type = #tpu.core_type<tc>, window_params = [{transform_indices = @transform_0, window_bounds = array<i64: 8, 16>}, {pipeline_mode = #tpu.pipeline_mode<synchronous>, transform_indices = @transform_1, window_bounds = array<i64: 16, 32>}, {pipeline_mode = #tpu.pipeline_mode<synchronous>, transform_indices = @transform_2, window_bounds = array<i64: 1, 32>}, {pipeline_mode = #tpu.pipeline_mode<synchronous>, transform_indices = @transform_3, window_bounds = array<i64: 32, 64>}, {pipeline_mode = #tpu.pipeline_mode<synchronous>, transform_indices = @transform_4, window_bounds = array<i64: 1, 64>}, {pipeline_mode = #tpu.pipeline_mode<synchronous>, transform_indices = @transform_5, window_bounds = array<i64: 64, 32>}, {pipeline_mode = #tpu.pipeline_mode<synchronous>, transform_indices = @transform_6, window_bounds = array<i64: 1, 32>}, {pipeline_mode = #tpu.pipeline_mode<synchronous>, transform_indices = @transform_7, window_bounds = array<i64: 32, 128>}, {pipeline_mode = #tpu.pipeline_mode<synchronous>, transform_indices = @transform_8, window_bounds = array<i64: 1, 128>}, {transform_indices = @transform_9, window_bounds = array<i64: 8, 128>}]} {
    %c0 = arith.constant 0 : index
    %c0_0 = arith.constant 0 : index
    %0 = vector.load %arg1[%c0, %c0_0] : memref<8x16xf32, #tpu.memory_space<vmem>>, vector<8x16xf32>
    %c0_1 = arith.constant 0 : index
    %c0_2 = arith.constant 0 : index
    %1 = vector.load %arg2[%c0_1, %c0_2] : memref<16x32xf32, #tpu.memory_space<vmem>>, vector<16x32xf32>
    %cst = arith.constant dense<0.000000e+00> : vector<8x32xf32>
    %2 = tpu.matmul %0, %1, %cst {dimension_numbers = #tpu.dot_dimension_numbers<[1], [0], [0], [1], [0, 0, 1, 1], [], []>} : vector<8x16xf32>, vector<16x32xf32>, vector<8x32xf32> -> vector<8x32xf32>
    %c0_3 = arith.constant 0 : index
    %c0_4 = arith.constant 0 : index
    %3 = vector.load %arg3[%c0_3, %c0_4] : memref<1x32xf32, #tpu.memory_space<vmem>>, vector<1x32xf32>
    %4 = vector.broadcast %3 : vector<1x32xf32> to vector<8x32xf32>
    %5 = arith.addf %2, %4 : vector<8x32xf32>
    %cst_5 = arith.constant 0.000000e+00 : f32
    %6 = vector.broadcast %cst_5 : f32 to vector<8x32xf32>
    %7 = arith.maximumf %5, %6 : vector<8x32xf32>
    %c0_6 = arith.constant 0 : index
    %c0_7 = arith.constant 0 : index
    %8 = vector.load %arg4[%c0_6, %c0_7] : memref<32x64xf32, #tpu.memory_space<vmem>>, vector<32x64xf32>
    %cst_8 = arith.constant dense<0.000000e+00> : vector<8x64xf32>
    %9 = tpu.matmul %7, %8, %cst_8 {dimension_numbers = #tpu.dot_dimension_numbers<[1], [0], [0], [1], [0, 0, 1, 1], [], []>} : vector<8x32xf32>, vector<32x64xf32>, vector<8x64xf32> -> vector<8x64xf32>
    %c0_9 = arith.constant 0 : index
    %c0_10 = arith.constant 0 : index
    %10 = vector.load %arg5[%c0_9, %c0_10] : memref<1x64xf32, #tpu.memory_space<vmem>>, vector<1x64xf32>
    %11 = vector.broadcast %10 : vector<1x64xf32> to vector<8x64xf32>
    %12 = arith.addf %9, %11 : vector<8x64xf32>
    %cst_11 = arith.constant 0.000000e+00 : f32
    %13 = vector.broadcast %cst_11 : f32 to vector<8x64xf32>
    %14 = arith.maximumf %12, %13 : vector<8x64xf32>
    %c0_12 = arith.constant 0 : index
    %c0_13 = arith.constant 0 : index
    %15 = vector.load %arg6[%c0_12, %c0_13] : memref<64x32xf32, #tpu.memory_space<vmem>>, vector<64x32xf32>
    %cst_14 = arith.constant dense<0.000000e+00> : vector<8x32xf32>
    %16 = tpu.matmul %14, %15, %cst_14 {dimension_numbers = #tpu.dot_dimension_numbers<[1], [0], [0], [1], [0, 0, 1, 1], [], []>} : vector<8x64xf32>, vector<64x32xf32>, vector<8x32xf32> -> vector<8x32xf32>
    %c0_15 = arith.constant 0 : index
    %c0_16 = arith.constant 0 : index
    %17 = vector.load %arg7[%c0_15, %c0_16] : memref<1x32xf32, #tpu.memory_space<vmem>>, vector<1x32xf32>
    %18 = vector.broadcast %17 : vector<1x32xf32> to vector<8x32xf32>
    %19 = arith.addf %16, %18 : vector<8x32xf32>
    %cst_17 = arith.constant 0.000000e+00 : f32
    %20 = vector.broadcast %cst_17 : f32 to vector<8x32xf32>
    %21 = arith.maximumf %19, %20 : vector<8x32xf32>
    %c0_18 = arith.constant 0 : index
    %c0_19 = arith.constant 0 : index
    %22 = vector.load %arg8[%c0_18, %c0_19] : memref<32x128xf32, #tpu.memory_space<vmem>>, vector<32x128xf32>
    %cst_20 = arith.constant dense<0.000000e+00> : vector<8x128xf32>
    %23 = tpu.matmul %21, %22, %cst_20 {dimension_numbers = #tpu.dot_dimension_numbers<[1], [0], [0], [1], [0, 0, 1, 1], [], []>} : vector<8x32xf32>, vector<32x128xf32>, vector<8x128xf32> -> vector<8x128xf32>
    %c0_21 = arith.constant 0 : index
    %c0_22 = arith.constant 0 : index
    %24 = vector.load %arg9[%c0_21, %c0_22] : memref<1x128xf32, #tpu.memory_space<vmem>>, vector<1x128xf32>
    %25 = vector.broadcast %24 : vector<1x128xf32> to vector<8x128xf32>
    %26 = arith.addf %23, %25 : vector<8x128xf32>
    %cst_23 = arith.constant dense<0xFF800000> : vector<8xf32>
    %27 = vector.multi_reduction <maximumf>, %26, %cst_23 [1] : vector<8x128xf32> to vector<8xf32>
    %28 = vector.shape_cast %27 : vector<8xf32> to vector<8x1xf32>
    %29 = vector.broadcast %28 : vector<8x1xf32> to vector<8x128xf32>
    %30 = arith.subf %26, %29 : vector<8x128xf32>
    %31 = math.exp %30 : vector<8x128xf32>
    %cst_24 = arith.constant dense<0.000000e+00> : vector<8xf32>
    %32 = vector.multi_reduction <add>, %31, %cst_24 [1] : vector<8x128xf32> to vector<8xf32>
    %33 = vector.shape_cast %32 : vector<8xf32> to vector<8x1xf32>
    %34 = vector.broadcast %33 : vector<8x1xf32> to vector<8x128xf32>
    %35 = arith.divf %31, %34 : vector<8x128xf32>
    %c0_25 = arith.constant 0 : index
    %c0_26 = arith.constant 0 : index
    %36 = vector.load %arg10[%c0_25, %c0_26] : memref<8x128xf32, #tpu.memory_space<vmem>>, vector<8x128xf32>
    tpu.vector_store %arg10[%c0_25, %c0_26], %35 {strides = array<i32>} : memref<8x128xf32, #tpu.memory_space<vmem>>, vector<8x128xf32>,
    return
  }
  func.func @transform_0(%arg0: i32) -> (i32, i32) {
    %c0_i32 = arith.constant 0 : i32
    %c0_i32_0 = arith.constant 0 : i32
    return %arg0, %c0_i32 : i32, i32
  }
  func.func @transform_1(%arg0: i32) -> (i32, i32) {
    %c0_i32 = arith.constant 0 : i32
    %c0_i32_0 = arith.constant 0 : i32
    %c0_i32_1 = arith.constant 0 : i32
    return %c0_i32, %c0_i32_0 : i32, i32
  }
  func.func @transform_2(%arg0: i32) -> (i32, i32) {
    %c0_i32 = arith.constant 0 : i32
    %c0_i32_0 = arith.constant 0 : i32
    %c0_i32_1 = arith.constant 0 : i32
    return %c0_i32, %c0_i32_0 : i32, i32
  }
  func.func @transform_3(%arg0: i32) -> (i32, i32) {
    %c0_i32 = arith.constant 0 : i32
    %c0_i32_0 = arith.constant 0 : i32
    %c0_i32_1 = arith.constant 0 : i32
    return %c0_i32, %c0_i32_0 : i32, i32
  }
  func.func @transform_4(%arg0: i32) -> (i32, i32) {
    %c0_i32 = arith.constant 0 : i32
    %c0_i32_0 = arith.constant 0 : i32
    %c0_i32_1 = arith.constant 0 : i32
    return %c0_i32, %c0_i32_0 : i32, i32
  }
  func.func @transform_5(%arg0: i32) -> (i32, i32) {
    %c0_i32 = arith.constant 0 : i32
    %c0_i32_0 = arith.constant 0 : i32
    %c0_i32_1 = arith.constant 0 : i32
    return %c0_i32, %c0_i32_0 : i32, i32
  }
  func.func @transform_6(%arg0: i32) -> (i32, i32) {
    %c0_i32 = arith.constant 0 : i32
    %c0_i32_0 = arith.constant 0 : i32
    %c0_i32_1 = arith.constant 0 : i32
    return %c0_i32, %c0_i32_0 : i32, i32
  }
  func.func @transform_7(%arg0: i32) -> (i32, i32) {
    %c0_i32 = arith.constant 0 : i32
    %c0_i32_0 = arith.constant 0 : i32
    %c0_i32_1 = arith.constant 0 : i32
    return %c0_i32, %c0_i32_0 : i32, i32
  }
  func.func @transform_8(%arg0: i32) -> (i32, i32) {
    %c0_i32 = arith.constant 0 : i32
    %c0_i32_0 = arith.constant 0 : i32
    %c0_i32_1 = arith.constant 0 : i32
    return %c0_i32, %c0_i32_0 : i32, i32
  }
  func.func @transform_9(%arg0: i32) -> (i32, i32) {
    %c0_i32 = arith.constant 0 : i32
    %c0_i32_0 = arith.constant 0 : i32
    return %arg0, %c0_i32 : i32, i32
  }
}

</mosaic_0001>

<bundles_post_ra>
// kernel: tpu_custom_call.1
= control target key start
LH: loop header
LB: loop body
LE: loop exit
PB: predicated region body
PF: predicated region fallthrough
CT: control target
= control target key end

     0   :  { %v539_v2 = vmov 0.0|0.0   ;;  %vm540_vm0 = vmmov 0   ;;  %v541_v4 = vmov 0.0   ;;  %s680_s0 = inlined_call_operand.vmem [shape: f32[8,16], index: 0, kind: input, shape index: {}]   ;;  %s681_s1 = inlined_call_operand.vmem [shape: f32[16,32], index: 1, kind: input, shape index: {}]   ;;  %s682_s2 = inlined_call_operand.vmem [shape: f32[1,32], index: 2, kind: input, shape index: {}]   ;;  %s683_s3 = inlined_call_operand.vmem [shape: f32[32,64], index: 3, kind: input, shape index: {}]   ;;  %s684_s4 = inlined_call_operand.vmem [shape: f32[1,64], index: 4, kind: input, shape index: {}]   ;;  %s685_s5 = inlined_call_operand.vmem [shape: f32[64,32], index: 5, kind: input, shape index: {}]   ;;  %s686_s6 = inlined_call_operand.vmem [shape: f32[1,32], index: 6, kind: input, shape index: {}]   ;;  %s687_s7 = inlined_call_operand.vmem [shape: f32[32,128], index: 7, kind: input, shape index: {}]   ;;  %s688_s8 = inlined_call_operand.vmem [shape: f32[1,128], index: 8, kind: input, shape index: {}]   ;;  %s689_s9 = inlined_call_operand.hbm [shape: f32[8,128], index: 9, kind: output, shape index: {}]  }
   0x1   :  { %v34_v0 = vld [vmem:[%s681_s1] sm:$0xff]  ;;  %v35_v1 = vld [vmem:[%s681_s1 + $0x8] sm:$0xff]  ;;  %480 = vmatprep.subr.bf16.mxu0 %v539_v2  ;;  %436 = vmatprep.mubr.msk.f32.mxu0 %vm540_vm0, %v541_v4 }
   0x2   :  { %v481_v3 = vpack.c.bf16 %v35_v1, %v34_v0  ;;  %v118_v5 = vld [vmem:[%s683_s3] sm:$0xff]  ;;  %v119_v6 = vld [vmem:[%s683_s3 + $0x8] sm:$0xff]  ;;  %483 = vmatprep.subr.bf16.mxu1 %v539_v2  ;;  %447 = vmatprep.mubr.msk.f32.mxu1 %vm540_vm0, %v541_v4 }
   0x3   :  { %v484_v7 = vpack.c.bf16 %v119_v6, %v118_v5 }
   0x4   :  { %14 = vsyncpa [#allocation3], 0  ;;  %482 = vmatpush3.bf16.msra.mxu0 %v481_v3  ;;  %v33_v8 = vld [vmem:[%s680_s0] sm:$0xff]  ;;  %vm43_vm1 = vcmask 130048   ;;  %v120_v9 = vld [vmem:[%s683_s3 + $0x10] sm:$0xff]  ;;  %vm129_vm2 = vcmask 261120  }
   0x5   :  { %485 = vmatpush3.bf16.msra.mxu1 %v484_v7  ;;  %489 = vmatprep.subr.bf16.mxu0 %v539_v2  ;;  %v121_v10 = vld [vmem:[%s683_s3 + $0x18] sm:$0xff]  ;;  %v204_v12 = vld [vmem:[%s685_s5] sm:$0xff]  ;;  %v205_v13 = vld [vmem:[%s685_s5 + $0x8] sm:$0xff]  ;;  %vm219_vm3 = vcmask 523264  }
   0x6   :  { %486 = vmatprep.subr.bf16.mxu1 %v539_v2  ;;  %v487_v11 = vpack.c.bf16 %v121_v10, %v120_v9  ;;  %v206_v14 = vld [vmem:[%s685_s5 + $0x10] sm:$0xff]  ;;  %v490_v15 = vpack.c.bf16 %v205_v13, %v204_v12  ;;  %v207_v16 = vld [vmem:[%s685_s5 + $0x18] sm:$0xff]  ;;  %v208_v18 = vld [vmem:[%s685_s5 + $0x20] sm:$0xff] }
   0x7   :  { %437 = vmatmul.mubr.msk.f32.vlgmr.msra.gmra.mrb[0].mxu0 %vm43_vm1, %v33_v8  ;;  %v493_v17 = vpack.c.bf16 %v207_v16, %v206_v14  ;;  %v209_v19 = vld [vmem:[%s685_s5 + $0x28] sm:$0xff]  ;;  %v402_v21 = vld [vmem:[%s682_s2] ss:$0 sm:$0xff]  ;;  %v210_v26 = vld [vmem:[%s685_s5 + $0x30] sm:$0xff] }
   0x8   :  { %466 = vmatprep.mubr.msk.f32.mxu0 %vm540_vm0, %v541_v4  ;;  %491 = vmatpush3.bf16.msra.mxu0 %v490_v15  ;;  %v496_v20 = vpack.c.bf16 %v209_v19, %v208_v18  ;;  %v211_v27 = vld [vmem:[%s685_s5 + $0x38] sm:$0xff]  ;;  %v294_v29 = vld [vmem:[%s687_s7] sm:$0xff]  ;;  %v295_v30 = vld [vmem:[%s687_s7 + $0x8] sm:$0xff] }
   0x9   :  { %488 = vmatpush3.bf16.msra.mxu1 %v487_v11  ;;  %492 = vmatprep.subr.bf16.mxu0 %v539_v2  ;;  %v499_v28 = vpack.c.bf16 %v211_v27, %v210_v26  ;;  %v502_v31 = vpack.c.bf16 %v295_v30, %v294_v29  ;;  %v404_v32 = vld [vmem:[%s684_s4] ss:$0 sm:$0xff]  ;;  %v296_v37 = vld [vmem:[%s687_s7 + $0x10] sm:$0xff]  ;;  %v297_v38 = vld [vmem:[%s687_s7 + $0x18] sm:$0xff] }
   0xa   :  { %501 = vmatprep.subr.bf16.mxu1 %v539_v2  ;;  %v505_v39 = vpack.c.bf16 %v297_v38, %v296_v37  ;;  %v406_v40 = vld [vmem:[%s686_s6] ss:$0 sm:$0xff]  ;;  %s542_s6 = smov [#allocation2]  }
   0xb   :  { %v408_v45 = vld [vmem:[%s688_s8] ss:$0 sm:$0xff]  ;;  %s394_s7 = sshll.u32 %s542_s6, 4  ;;  %s395_s7 = int_to_ptr.vmem [resolvable:$true] %s394_s7 }
   0xc   :  { %494 = vmatpush3.bf16.msra.mxu0 %v493_v17  ;;  %s515_s26 = scalar_lea.vmem %s395_s7, 128  ;;  %p520_p1 = scmp.lt.s32.totalorder %s395_s7, %s395_s7 }
   0xd   :  { %495 = vmatprep.subr.bf16.mxu0 %v539_v2  ;;  %p516_p0 = scmp.ne.s32.totalorder %s395_s7, %s515_s26  ;;  %p521_p2 = scmp.lt.s32.totalorder %s515_s26, %s515_s26 }
   0xf   :  { %p522_p3 = por %p521_p2, %p520_p1 }
  0x10   :  { %497 = vmatpush3.bf16.msra.mxu0 %v496_v20 }
  0x11   :  { %498 = vmatprep.subr.bf16.mxu0 %v539_v2  ;;  %p523_p4 = pnand %p522_p3, %p516_p0 }
  0x14   :  { %500 = vmatpush3.bf16.msra.mxu0 %v499_v28 }
  0xda   :  { %v113_v22 = vpop.f32.mrb[0].mxu0 }
  0xdb   :  { %v114_v23 = vadd.f32 %v402_v21, %v113_v22  ;;  %v438_v24 = vpop.f32.mrb[1].mxu0 }
  0xdd   :  { %v117_v25 = vmax.f32 %v114_v23, 0.0 }
  0xdf   :  { %448 = vmatmul.mubr.msk.f32.vlgmr.msra.gmra.mrb[0].mxu1 %vm129_vm2, %v117_v25 }
  0xe0   :  { %477 = vmatprep.mubr.msk.f32.mxu1 %vm540_vm0, %v541_v4  ;;  %503 = vmatpush3.bf16.msra.mxu1 %v502_v31 }
  0xe1   :  { %504 = vmatprep.subr.bf16.mxu1 %v539_v2 }
  0xe4   :  { %506 = vmatpush3.bf16.msra.mxu1 %v505_v39 }
 0x1b2   :  { %v199_v33 = vpop.f32.mrb[0].mxu1 }
 0x1b3   :  { %v200_v34 = vadd.f32 %v404_v32, %v199_v33  ;;  %v449_v35 = vpop.f32.mrb[1].mxu1 }
 0x1b5   :  { %v203_v36 = vmax.f32 %v200_v34, 0.0 }
 0x1b7   :  { %467 = vmatmul.mubr.msk.f32.vlgmr.msra.gmra.mrb[2].mxu0 %vm219_vm3, %v203_v36 }
 0x28a   :  { %v289_v41 = vpop.f32.mrb[2].mxu0 }
 0x28b   :  { %v290_v42 = vadd.f32 %v406_v40, %v289_v41  ;;  %v468_v43 = vpop.f32.mrb[3].mxu0 }
 0x28d   :  { %v293_v44 = vmax.f32 %v290_v42, 0.0 }
 0x28f   :  { %478 = vmatmul.mubr.msk.f32.vlgmr.msra.gmra.mrb[2].mxu1 %vm129_vm2, %v293_v44 }
 0x362   :  { %v374_v46 = vpop.f32.mrb[2].mxu1 }
 0x363   :  { %v375_v47 = vadd.f32 %v408_v45, %v374_v46  ;;  %v479_v48 = vpop.f32.mrb[3].mxu1 }
 0x365   :  { %378 = vmax.xlane.f32.xlu0 %v375_v47 }
 0x3f2   :  { %v379_v49 = vpop.xlane.xlu0 %378 }
 0x3f3   :  { %v380_v50 = vsub.f32 %v375_v47, %v379_v49 }
 0x3f5   :  { %v381_v51 = vmul.f32 1.442695, %v380_v50 }
 0x3f7   :  { %511 = vpow2.f32 %v381_v51 }
 0x401   :  { %v512_v52 = vpop.eup %511 }
 0x402   :  { %383 = vadd.xlane.f32.xlu0 %v512_v52 }
 0x48f   :  { %v384_v53 = vpop.xlane.xlu0 %383 }
 0x490   :  { %513 = vrcp.f32 %v384_v53 }
 0x49a   :  { %v514_v54 = vpop.eup %513 }
 0x49b   :  { %v386_v55 = vmul.f32 %v514_v54, %v512_v52 }
 0x49d   :  { %387 = vst [vmem:[#allocation2] sm:$0xff] %v386_v55 }
 0x49e   :  { %526 = shalt.err (!%p523_p4)
}
 0x49f   :  { %s527_s28 = scalar_lea.hbm %s689_s9, 128 }
 0x4a0   :  { %p528_p5 = scmp.ne.s32.totalorder %s689_s9, %s527_s28  ;;  %p531_p6 = scmp.lt.u32.totalorder %s527_s28, %s689_s9 }
 0x4a2   :  { %p533_p7 = pnand %p531_p6, %p528_p5 }
 0x4a4   :  { %536 = shalt.err (!%p533_p7)
}
 0x4a5   :  { %397 = dma.vmem_to_hbm [thread:$0]  %s395_s7, 128, %s689_s9, [#allocation3]  }
 0x4a6   :  { %537 = dma.done.wait [#allocation3], 128  }
 0x4a7   :  { %538 = vsyncadd [#allocation3], 4294967168 }
 0x4a8   :  { %401 = vsyncpa [#allocation3], 1 }

</bundles_post_ra>
